<compile_context>
chip_gen: v6e
topology: v6e:2x2x1
jax: 0.10.0
libtpu: 0.0.40
codegen_flags: <defaults>
</compile_context>

<pallas_src>
import functools

import jax
import jax.numpy as jnp
from jax.experimental import pallas as pl
from jax.experimental.pallas import tpu as pltpu


def _round_up(x: int, m: int) -> int:
    return ((x + m - 1) // m) * m


def _vmem_limit_bytes() -> int:
    """Scoped-VMEM limit derived from the device's physical VMEM capacity."""
    try:
        cap = int(pltpu.get_tpu_info().vmem_capacity_bytes)
    except Exception:
        cap = 64 * 1024 * 1024            # v7x-safe fallback (smallest per-TC VMEM)
    return max(32 * 1024 * 1024, min((cap * 3) // 4, 112 * 1024 * 1024))


def _choose_tile_n(n: int, c: int, itemsize: int, budget: int) -> int:
    """Largest row tile whose streamed working set fits the VMEM budget.

    Per column-of-tile bytes = 2*itemsize (double-buffered input slab)
                             + 8         (f32 slab + one f32 elementwise temp).
    """
    base = _round_up(max(n, 1), 8)
    if base <= 128:                        # whole batch in one small tile
        return base
    per_col = 2 * itemsize + 8
    for t in (1024, 512, 256, 128):
        if t <= base and t * c * per_col <= budget:
            return t
    # TODO(synk): for very wide C even a 128-row full-width slab can exceed the
    # v7x VMEM budget; that case needs a C-tiled online (running-max) LSE with
    # the class axis as a second, "arbitrary" grid dimension.
    return 128


def _ce_rows_kernel(scores_ref, out_ref, *, n, c, tile_n, num_tiles, diag_by_slice):
    """Per-row cross-entropy partials for one (tile_n, C) row slab.

    scores_ref : (tile_n, C) row slab (full class width, raw dtype)
    out_ref    : (1, tile_n) lane-dense per-row loss; 0 for rows >= n
    """
    i = pl.program_id(0)

    # Numerically stable log-sum-exp over the class axis (f32 accumulation).
    s = scores_ref[...].astype(jnp.float32)                            # (T, C)
    row_max = jnp.max(s, axis=-1, keepdims=True)                       # (T, 1)
    sum_exp = jnp.sum(jnp.exp(s - row_max), axis=-1, keepdims=True)    # (T, 1)
    lse = row_max + jnp.log(sum_exp)                                   # (T, 1)

    row_local = jax.lax.broadcasted_iota(jnp.int32, (tile_n, 1), 0)
    row_global = i * tile_n + row_local                                # (T, 1)

    # labels = arange(N): the target logit of global row r is scores[r, r].
    if diag_by_slice:
        # Diagonal sub-block lives inside this slab (num_tiles*tile_n <= C):
        # slice it out of VMEM instead of DMA-ing the matrix a second time.
        if num_tiles == 1:
            d = s[:, :tile_n]                                          # static slice
        else:
            start = pl.multiple_of(i * tile_n, tile_n)                 # 128-aligned
            d = scores_ref[:, pl.ds(start, tile_n)].astype(jnp.float32)
        rr = jax.lax.broadcasted_iota(jnp.int32, (tile_n, tile_n), 0)
        cc = jax.lax.broadcasted_iota(jnp.int32, (tile_n, tile_n), 1)
        diag = jnp.sum(jnp.where(rr == cc, d, 0.0), axis=-1, keepdims=True)
    else:
        # Ragged square-ish case (num_tiles*tile_n > C): in-bounds slicing is
        # impossible, so pick the target logit with a compare/select/reduce on
        # the slab already in VMEM (VPU/XLU work hidden under the HBM stream).
        col = jax.lax.broadcasted_iota(jnp.int32, (tile_n, c), 1)
        diag = jnp.sum(jnp.where(col == row_global, s, 0.0), axis=-1, keepdims=True)

    loss = jnp.where(row_global < n, lse - diag, 0.0)                  # (T, 1)
    out_ref[...] = jnp.reshape(loss, (1, tile_n))                      # lane-dense store


def criterion(scores: jax.Array) -> jax.Array:
    """cross_entropy(scores, arange(N), reduction='mean') as a Pallas TPU kernel."""
    assert scores.ndim == 2, "scores must be (batch, num_classes)"
    n, c = scores.shape
    assert n <= c, "labels = arange(N) requires N <= num_classes"

    itemsize = jnp.dtype(scores.dtype).itemsize
    vmem_limit = _vmem_limit_bytes()
    tile_n = _choose_tile_n(n, c, itemsize, budget=vmem_limit // 2)
    num_tiles = pl.cdiv(n, tile_n)
    diag_by_slice = num_tiles * tile_n <= c    # in-slab diagonal slice stays in-bounds

    in_spec_kwargs = {}
    if num_tiles >= 3 and tile_n * c * itemsize <= (1 << 20):
        # Short-C shapes with many steps: a third buffer hides DMA issue latency.
        in_spec_kwargs["pipeline_mode"] = pl.Buffered(3)

    kernel = functools.partial(
        _ce_rows_kernel, n=n, c=c, tile_n=tile_n,
        num_tiles=num_tiles, diag_by_slice=diag_by_slice)

    per_row = pl.pallas_call(
        kernel,
        out_shape=jax.ShapeDtypeStruct((num_tiles, tile_n), jnp.float32),
        grid=(num_tiles,),
        in_specs=[pl.BlockSpec((tile_n, c), lambda i: (i, 0), **in_spec_kwargs)],
        out_specs=pl.BlockSpec((1, tile_n), lambda i: (i, 0)),
        compiler_params=pltpu.CompilerParams(
            dimension_semantics=("parallel",),     # megacore-friendly row axis
            vmem_limit_bytes=vmem_limit,
        ),
    )(scores)

    # Tiny final reduction in plain XLA (masked/padded rows contribute exactly 0).
    return jnp.sum(per_row) / jnp.float32(n)


def _reference(scores: jax.Array) -> jax.Array:
    # Pure-JAX reference for sanity checking.
    s = scores.astype(jnp.float32)
    lse = jax.scipy.special.logsumexp(s, axis=-1)
    return jnp.mean(lse - jnp.diagonal(s))


if __name__ == "__main__":
    key = jax.random.PRNGKey(0)
    k1, k2, k3 = jax.random.split(key, 3)

    # Small shape consistent with the module: batch=8 rows, 16 classes
    # (labels arange(8) are valid since 8 <= 16). Single-tile path.
    s1 = jax.random.normal(k1, (8, 16), dtype=jnp.float32)
    o1 = criterion(s1)
    jax.block_until_ready(o1)
    r1 = _reference(s1)
    assert jnp.allclose(o1, r1, atol=1e-5, rtol=1e-5), (o1, r1)

    # Multi-tile grid, ragged last tile, square-ish case (mask-based diag path).
    s2 = jax.random.normal(k2, (130, 200), dtype=jnp.float32)
    o2 = criterion(s2)
    jax.block_until_ready(o2)
    r2 = _reference(s2)
    assert jnp.allclose(o2, r2, atol=1e-5, rtol=1e-5), (o2, r2)

    # Multi-tile grid, wider classes (in-slab diagonal-slice path, dynamic start).
    s3 = jax.random.normal(k3, (130, 512), dtype=jnp.float32)
    o3 = criterion(s3)
    jax.block_until_ready(o3)
    r3 = _reference(s3)
    assert jnp.allclose(o3, r3, atol=1e-5, rtol=1e-5), (o3, r3)

    print("KERNEL_OK")
</pallas_src>

<mosaic_0001>
module attributes {stable_mosaic.version = 11 : i64} {
  func.func @_ce_rows_kernel(%arg0: i32, %arg1: memref<8x16xf32, #tpu.memory_space<vmem>>, %arg2: memref<1x8xf32, #tpu.memory_space<vmem>>) attributes {dimension_semantics = [#tpu.dimension_semantics<parallel>], iteration_bounds = array<i64: 1>, scalar_prefetch = 0 : i64, scratch_operands = 0 : i64, tpu.core_type = #tpu.core_type<tc>, window_params = [{transform_indices = @transform_0, window_bounds = array<i64: 8, 16>}, {transform_indices = @transform_1, window_bounds = array<i64: 1, 8>}]} {
    %c0 = arith.constant 0 : index
    %c0_0 = arith.constant 0 : index
    %0 = vector.load %arg1[%c0, %c0_0] : memref<8x16xf32, #tpu.memory_space<vmem>>, vector<8x16xf32>
    %cst = arith.constant dense<0xFF800000> : vector<8xf32>
    %1 = vector.multi_reduction <maximumf>, %0, %cst [1] : vector<8x16xf32> to vector<8xf32>
    %2 = vector.shape_cast %1 : vector<8xf32> to vector<8x1xf32>
    %3 = vector.broadcast %2 : vector<8x1xf32> to vector<8x16xf32>
    %4 = arith.subf %0, %3 : vector<8x16xf32>
    %5 = math.exp %4 : vector<8x16xf32>
    %cst_1 = arith.constant dense<0.000000e+00> : vector<8xf32>
    %6 = vector.multi_reduction <add>, %5, %cst_1 [1] : vector<8x16xf32> to vector<8xf32>
    %7 = vector.shape_cast %6 : vector<8xf32> to vector<8x1xf32>
    %8 = math.log %7 : vector<8x1xf32>
    %9 = arith.addf %2, %8 : vector<8x1xf32>
    %10 = tpu.iota {dimensions = array<i32: 0>} : vector<8x1xi32>
    %c8_i32 = arith.constant 8 : i32
    %11 = arith.muli %arg0, %c8_i32 : i32
    %12 = vector.broadcast %11 : i32 to vector<8x1xi32>
    %13 = arith.addi %12, %10 : vector<8x1xi32>
    %14 = vector.extract_strided_slice %0 {offsets = [0, 0], sizes = [8, 8], strides = [1, 1]} : vector<8x16xf32> to vector<8x8xf32>
    %15 = tpu.iota {dimensions = array<i32: 0>} : vector<8x8xi32>
    %16 = tpu.iota {dimensions = array<i32: 1>} : vector<8x8xi32>
    %17 = arith.cmpi eq, %15, %16 : vector<8x8xi32>
    %cst_2 = arith.constant 0.000000e+00 : f32
    %18 = vector.broadcast %cst_2 : f32 to vector<8x8xf32>
    %19 = arith.select %17, %14, %18 : vector<8x8xi1>, vector<8x8xf32>
    %cst_3 = arith.constant dense<0.000000e+00> : vector<8xf32>
    %20 = vector.multi_reduction <add>, %19, %cst_3 [1] : vector<8x8xf32> to vector<8xf32>
    %21 = vector.shape_cast %20 : vector<8xf32> to vector<8x1xf32>
    %c8_i32_4 = arith.constant 8 : i32
    %22 = vector.broadcast %c8_i32_4 : i32 to vector<8x1xi32>
    %23 = arith.cmpi slt, %13, %22 : vector<8x1xi32>
    %24 = arith.subf %9, %21 : vector<8x1xf32>
    %cst_5 = arith.constant 0.000000e+00 : f32
    %25 = vector.broadcast %cst_5 : f32 to vector<8x1xf32>
    %26 = arith.select %23, %24, %25 : vector<8x1xi1>, vector<8x1xf32>
    %27 = vector.shape_cast %26 : vector<8x1xf32> to vector<1x8xf32>
    %c0_6 = arith.constant 0 : index
    %c0_7 = arith.constant 0 : index
    %28 = vector.load %arg2[%c0_6, %c0_7] : memref<1x8xf32, #tpu.memory_space<vmem>>, vector<1x8xf32>
    tpu.vector_store %arg2[%c0_6, %c0_7], %27 {strides = array<i32>} : memref<1x8xf32, #tpu.memory_space<vmem>>, vector<1x8xf32>,
    return
  }
  func.func @transform_0(%arg0: i32) -> (i32, i32) {
    %c0_i32 = arith.constant 0 : i32
    %c0_i32_0 = arith.constant 0 : i32
    return %arg0, %c0_i32 : i32, i32
  }
  func.func @transform_1(%arg0: i32) -> (i32, i32) {
    %c0_i32 = arith.constant 0 : i32
    %c0_i32_0 = arith.constant 0 : i32
    return %arg0, %c0_i32 : i32, i32
  }
}

</mosaic_0001>

<bundles_post_ra>
// kernel: tpu_custom_call.1
= control target key start
LH: loop header
LB: loop body
LE: loop exit
PB: predicated region body
PF: predicated region fallthrough
CT: control target
= control target key end

     0   :  { %6 = vsyncpa [#allocation3], 0  ;;  %s144_s0 = inlined_call_operand.hbm [shape: f32[8,16], index: 0, kind: input, shape index: {}]   ;;  %s145_s1 = inlined_call_operand.hbm [shape: f32[1,8], index: 1, kind: output, shape index: {}]  }
   0x1   :  { %7 = vsyncpa [#allocation4], 0  ;;  %s124_s6 = smov [#allocation2]  }
   0x2   :  { %s14_s7 = sshll.u32 %s124_s6, 4  ;;  %s15_s7 = int_to_ptr.vmem [resolvable:$true] %s14_s7 }
   0x3   :  { %s88_s8 = scalar_lea.vmem %s15_s7, 128  ;;  %p93_p1 = scmp.lt.s32.totalorder %s15_s7, %s15_s7 }
   0x4   :  { %p89_p0 = scmp.ne.s32.totalorder %s15_s7, %s88_s8  ;;  %p94_p2 = scmp.lt.s32.totalorder %s88_s8, %s88_s8 }
   0x6   :  { %p95_p3 = por %p94_p2, %p93_p1 }
   0x8   :  { %p96_p4 = pnand %p95_p3, %p89_p0 }
   0xa   :  { %99 = shalt.err (!%p96_p4)
}
   0xb   :  { %17 = dma.hbm_to_vmem [thread:$0]  %s144_s0, 128, %s15_s7, [#allocation3]  }
   0xc   :  { %120 = dma.done.wait [#allocation3], 128  }
   0xd   :  { %121 = vsyncadd [#allocation3], 4294967168  ;;  %vm22_vm0 = vcmask 130048   ;;  %v21_v0 = vld [vmem:[#allocation2] sm:$0xff]  ;;  %v35_v2 = vlaneseq  ;;  %vm44_vm1 = vcmask 64512   ;;  %s125_s0 = smov [#allocation5]  }
   0xe   :  { %v23_v1 = vsel %vm22_vm0, %v21_v0, -inf  ;;  %s65_s11 = sshll.u32 %s125_s0, 4  ;;  %vm57_vm3 = vcmask 57344   ;;  %s66_s11 = int_to_ptr.vmem [resolvable:$true] %s65_s11 }
   0xf   :  { %24 = vmax.xlane.f32.xlu0 %v23_v1  ;;  %v36_v3 = vshrl.u32 %v35_v2, 7  ;;  %v41_v4 = vand.u32 127, %v35_v2  ;;  %s100_s12 = scalar_lea.vmem %s66_s11, 16  ;;  %s104_s13 = scalar_lea.vmem %s66_s11, 32 }
  0x10   :  { %p101_p5 = scmp.ne.s32.totalorder %s66_s11, %s100_s12  ;;  %p105_p6 = scmp.lt.s32.totalorder %s66_s11, %s66_s11 }
  0x11   :  { %vm42_vm2 = vcmp.eq.s32.totalorder %v36_v3, %v41_v4  ;;  %v54_v16 = vsub.s32 %v41_v4, %v36_v3  ;;  %p106_p7 = scmp.lt.s32.totalorder %s104_s13, %s100_s12 }
  0x12   :  { %v43_v5 = vsel %vm42_vm2, %v21_v0, 0.0 }
  0x13   :  { %v45_v6 = vsel %vm44_vm1, %v43_v5, 0.0  ;;  %p107_p8 = por %p106_p7, %p105_p6 }
  0x14   :  { %46 = vadd.xlane.f32.xlu1 %v45_v6 }
  0x15   :  { %p108_p9 = pnand %p107_p8, %p101_p5 }
  0x98   :  { %v25_v7 = vpop.xlane.xlu0 %24 }
  0x99   :  { %v26_v8 = vsub.f32 %v21_v0, %v25_v7 }
  0x9b   :  { %v27_v9 = vmul.f32 1.442695, %v26_v8 }
  0x9d   :  { %76 = vpow2.f32 %v27_v9  ;;  %v47_v15 = vpop.xlane.xlu1 %46 }
  0xaa   :  { %v77_v10 = vpop.eup %76 }
  0xab   :  { %v29_v11 = vsel %vm22_vm0, %v77_v10, 0.0 }
  0xac   :  { %30 = vadd.xlane.f32.xlu0 %v29_v11 }
 0x135   :  { %v31_v12 = vpop.xlane.xlu0 %30 }
 0x136   :  { %78 = vlog2.f32 %v31_v12 }
 0x143   :  { %v79_v13 = vpop.eup %78 }
 0x144   :  { %v33_v14 = vmul.f32 0.6931472, %v79_v13 }
 0x146   :  { %v34_v17 = vadd.f32 %v33_v14, %v25_v7 }
 0x148   :  { %v49_v18 = vsub.f32 %v34_v17, %v47_v15 }
 0x14a   :  { %v55_v19 = vrot.slane %v49_v18, %v54_v16 }
 0x14c   :  { %58 = vst.msk [vmem:[#allocation5] sm:$0x1] %vm57_vm3, %v55_v19 }
 0x14d   :  { %111 = shalt.err (!%p108_p9)
}
 0x14e   :  { %68 = dma.vmem_to_hbm [thread:$0]  %s66_s11, 16, %s145_s1, [#allocation4]  }
 0x14f   :  { %122 = dma.done.wait [#allocation4], 16  }
 0x150   :  { %123 = vsyncadd [#allocation4], 4294967280 }
 0x151   :  { %72 = vsyncpa [#allocation3], 1 }
 0x152   :  { %73 = vsyncpa [#allocation4], 1 }

</bundles_post_ra>
